<compile_context>
chip_gen: v5e
topology: v5e:2x2
jax: 0.10.0
libtpu: 0.0.40
codegen_flags: <defaults>
</compile_context>

<pallas_src>
import functools

import jax
import jax.numpy as jnp
from jax.experimental import pallas as pl
from jax.experimental.pallas import tpu as pltpu

LEAKY_SLOPE = 0.01  # PyTorch nn.LeakyReLU default negative_slope


def _leaky_relu(x):
    # max(x, slope*x) == LeakyReLU(x) for slope in (0, 1): one mul + one max.
    return jnp.maximum(x, LEAKY_SLOPE * x)


def critic_kernel(state_ref, action_ref,
                  w1s_ref, w1a_ref, b1_ref,
                  w2_ref, b2_ref, w3_ref, b3_ref,
                  q_ref):
    """One batch tile of the twin-Q forward pass, fully in VMEM.

    Shapes (TM = batch tile, S = state_size, A = action_size, H = hidsize):
      state_ref : (TM, S)        action_ref : (TM, A)
      w1s_ref   : (S, 2H)        w1a_ref    : (A, 2H)      b1_ref : (1, 2H)
      w2_ref    : (2, H, H)      b2_ref     : (2, 1, H)
      w3_ref    : (2, H, 1)      b3_ref     : (2, 1, 1)
      q_ref     : (TM, 2)   -> column 0 = q1, column 1 = q2
    """
    hid = w2_ref.shape[-1]

    # Layer 1: lane-fused over both twins, K-split over state/action
    # (no concatenated `sa` buffer is ever materialized).
    h1 = jnp.dot(state_ref[...], w1s_ref[...],
                 preferred_element_type=jnp.float32)
    h1 = h1 + jnp.dot(action_ref[...], w1a_ref[...],
                      preferred_element_type=jnp.float32)
    h1 = _leaky_relu(h1 + b1_ref[...])                       # (TM, 2H)

    def tail(h, w2, b2, w3, b3):
        h = _leaky_relu(jnp.dot(h, w2, preferred_element_type=jnp.float32) + b2)
        return _leaky_relu(jnp.dot(h, w3, preferred_element_type=jnp.float32) + b3)

    q1 = tail(h1[:, :hid], w2_ref[0], b2_ref[0], w3_ref[0], b3_ref[0])  # (TM, 1)
    q2 = tail(h1[:, hid:], w2_ref[1], b2_ref[1], w3_ref[1], b3_ref[1])  # (TM, 1)

    # Single merged output slab (one store region per tile).
    q_ref[...] = jnp.concatenate([q1, q2], axis=1)           # (TM, 2)


def make_critic_params(key, state_size, action_size, hidsize, dtype=jnp.float32):
    """Deterministic synthetic parameters (PyTorch-like uniform fan-in init).

    Returns the 'raw' 12-tuple (per-network, per-layer) used by the pure-JAX
    reference; pack with `pack_critic_params` before calling the kernel.
    """
    in_dim = state_size + action_size

    def linear(k, fan_in, fan_out):
        kw, kb = jax.random.split(k)
        bound = 1.0 / jnp.sqrt(jnp.float32(fan_in))
        w = jax.random.uniform(kw, (fan_in, fan_out), dtype, -bound, bound)
        b = jax.random.uniform(kb, (1, fan_out), dtype, -bound, bound)
        return w, b

    keys = jax.random.split(key, 6)
    # Q1 network
    w1a, b1a = linear(keys[0], in_dim, hidsize)
    w2a, b2a = linear(keys[1], hidsize, hidsize)
    w3a, b3a = linear(keys[2], hidsize, 1)
    # Q2 network
    w1b, b1b = linear(keys[3], in_dim, hidsize)
    w2b, b2b = linear(keys[4], hidsize, hidsize)
    w3b, b3b = linear(keys[5], hidsize, 1)
    return (w1a, b1a, w2a, b2a, w3a, b3a,
            w1b, b1b, w2b, b2b, w3b, b3b)


def pack_critic_params(raw_params, state_size):
    """Pack per-network params into the fused/stacked layout the kernel uses."""
    (w1a, b1a, w2a, b2a, w3a, b3a,
     w1b, b1b, w2b, b2b, w3b, b3b) = raw_params

    # Layer 1: fuse twins along the output (lane) dim, split rows state/action.
    w1 = jnp.concatenate([w1a, w1b], axis=1)          # (S+A, 2H)
    w1_state = w1[:state_size]                        # (S, 2H)
    w1_action = w1[state_size:]                       # (A, 2H)
    b1 = jnp.concatenate([b1a, b1b], axis=1)          # (1, 2H)

    # Layers 2/3: stack twins along a leading axis of size 2.
    w2 = jnp.stack([w2a, w2b], axis=0)                # (2, H, H)
    b2 = jnp.stack([b2a, b2b], axis=0)                # (2, 1, H)
    w3 = jnp.stack([w3a, w3b], axis=0)                # (2, H, 1)
    b3 = jnp.stack([b3a, b3b], axis=0)                # (2, 1, 1)
    return (w1_state, w1_action, b1, w2, b2, w3, b3)


@functools.partial(jax.jit, static_argnames=("block_b",))
def critic_forward(state, action, packed_params, *, block_b=256):
    """Twin-Q forward. Returns (q1, q2), each (B, 1), matching the PyTorch module."""
    w1_state, w1_action, b1, w2, b2, w3, b3 = packed_params
    batch, state_size = state.shape
    action_size = action.shape[1]

    # Batch tile: whole batch if small, else a lane/sublane-friendly tile.
    if batch <= block_b:
        tm = batch                       # full dim -> always legal
    else:
        tm = max(8, (block_b // 8) * 8)  # divisible by 8
    grid = (pl.cdiv(batch, tm),)

    def resident(arr):
        # Whole-array block, same block for every grid step -> stays in VMEM.
        ndim = arr.ndim
        return pl.BlockSpec(arr.shape, lambda i, _n=ndim: (0,) * _n)

    out = pl.pallas_call(
        critic_kernel,
        out_shape=jax.ShapeDtypeStruct((batch, 2), jnp.float32),
        grid=grid,
        in_specs=[
            pl.BlockSpec((tm, state_size), lambda i: (i, 0)),
            pl.BlockSpec((tm, action_size), lambda i: (i, 0)),
            resident(w1_state), resident(w1_action), resident(b1),
            resident(w2), resident(b2), resident(w3), resident(b3),
        ],
        out_specs=pl.BlockSpec((tm, 2), lambda i: (i, 0)),
        compiler_params=pltpu.CompilerParams(
            dimension_semantics=("parallel",)),
    )(state, action, w1_state, w1_action, b1, w2, b2, w3, b3)

    return out[:, 0:1], out[:, 1:2]


def critic_forward_ref(state, action, raw_params):
    """Pure-JAX reference (mirrors the PyTorch module exactly)."""
    (w1a, b1a, w2a, b2a, w3a, b3a,
     w1b, b1b, w2b, b2b, w3b, b3b) = raw_params
    sa = jnp.concatenate([state, action], axis=1)

    def mlp(w1, b1, w2, b2, w3, b3):
        h = _leaky_relu(sa @ w1 + b1)
        h = _leaky_relu(h @ w2 + b2)
        return _leaky_relu(h @ w3 + b3)

    return (mlp(w1a, b1a, w2a, b2a, w3a, b3a),
            mlp(w1b, b1b, w2b, b2b, w3b, b3b))


if __name__ == "__main__":
    # Small shapes consistent with the module's forward signature.
    batch = 8
    state_size = 24
    action_size = 8
    hidsize = 32

    key = jax.random.PRNGKey(0)
    k_params, k_state, k_action = jax.random.split(key, 3)

    raw_params = make_critic_params(k_params, state_size, action_size, hidsize)
    packed_params = pack_critic_params(raw_params, state_size)

    state = jax.random.normal(k_state, (batch, state_size), jnp.float32)
    action = jax.random.normal(k_action, (batch, action_size), jnp.float32)

    q1, q2 = critic_forward(state, action, packed_params)
    q1 = jax.block_until_ready(q1)
    q2 = jax.block_until_ready(q2)

    q1_ref, q2_ref = critic_forward_ref(state, action, raw_params)
    assert q1.shape == (batch, 1) and q2.shape == (batch, 1)
    assert jnp.allclose(q1, q1_ref, atol=1e-5, rtol=1e-5)
    assert jnp.allclose(q2, q2_ref, atol=1e-5, rtol=1e-5)

    print("KERNEL_OK")
</pallas_src>

<mosaic_0001>
module attributes {stable_mosaic.version = 11 : i64} {
  func.func @critic_kernel(%arg0: i32, %arg1: memref<8x24xf32, #tpu.memory_space<vmem>>, %arg2: memref<8x8xf32, #tpu.memory_space<vmem>>, %arg3: memref<24x64xf32, #tpu.memory_space<vmem>>, %arg4: memref<8x64xf32, #tpu.memory_space<vmem>>, %arg5: memref<1x64xf32, #tpu.memory_space<vmem>>, %arg6: memref<2x32x32xf32, #tpu.memory_space<vmem>>, %arg7: memref<2x1x32xf32, #tpu.memory_space<vmem>>, %arg8: memref<2x32x1xf32, #tpu.memory_space<vmem>>, %arg9: memref<2x1x1xf32, #tpu.memory_space<vmem>>, %arg10: memref<8x2xf32, #tpu.memory_space<vmem>>) attributes {dimension_semantics = [#tpu.dimension_semantics<parallel>], iteration_bounds = array<i64: 1>, scalar_prefetch = 0 : i64, scratch_operands = 0 : i64, tpu.core_type = #tpu.core_type<tc>, window_params = [{transform_indices = @transform_0, window_bounds = array<i64: 8, 24>}, {transform_indices = @transform_1, window_bounds = array<i64: 8, 8>}, {pipeline_mode = #tpu.pipeline_mode<synchronous>, transform_indices = @transform_2, window_bounds = array<i64: 24, 64>}, {pipeline_mode = #tpu.pipeline_mode<synchronous>, transform_indices = @transform_3, window_bounds = array<i64: 8, 64>}, {pipeline_mode = #tpu.pipeline_mode<synchronous>, transform_indices = @transform_4, window_bounds = array<i64: 1, 64>}, {pipeline_mode = #tpu.pipeline_mode<synchronous>, transform_indices = @transform_5, window_bounds = array<i64: 2, 32, 32>}, {pipeline_mode = #tpu.pipeline_mode<synchronous>, transform_indices = @transform_6, window_bounds = array<i64: 2, 1, 32>}, {pipeline_mode = #tpu.pipeline_mode<synchronous>, transform_indices = @transform_7, window_bounds = array<i64: 2, 32, 1>}, {pipeline_mode = #tpu.pipeline_mode<synchronous>, transform_indices = @transform_8, window_bounds = array<i64: 2, 1, 1>}, {transform_indices = @transform_9, window_bounds = array<i64: 8, 2>}]} {
    %c0 = arith.constant 0 : index
    %c0_0 = arith.constant 0 : index
    %0 = vector.load %arg1[%c0, %c0_0] : memref<8x24xf32, #tpu.memory_space<vmem>>, vector<8x24xf32>
    %c0_1 = arith.constant 0 : index
    %c0_2 = arith.constant 0 : index
    %1 = vector.load %arg3[%c0_1, %c0_2] : memref<24x64xf32, #tpu.memory_space<vmem>>, vector<24x64xf32>
    %cst = arith.constant dense<0.000000e+00> : vector<8x64xf32>
    %2 = tpu.matmul %0, %1, %cst {dimension_numbers = #tpu.dot_dimension_numbers<[1], [0], [0], [1], [0, 0, 1, 1], [], []>} : vector<8x24xf32>, vector<24x64xf32>, vector<8x64xf32> -> vector<8x64xf32>
    %c0_3 = arith.constant 0 : index
    %c0_4 = arith.constant 0 : index
    %3 = vector.load %arg2[%c0_3, %c0_4] : memref<8x8xf32, #tpu.memory_space<vmem>>, vector<8x8xf32>
    %c0_5 = arith.constant 0 : index
    %c0_6 = arith.constant 0 : index
    %4 = vector.load %arg4[%c0_5, %c0_6] : memref<8x64xf32, #tpu.memory_space<vmem>>, vector<8x64xf32>
    %cst_7 = arith.constant dense<0.000000e+00> : vector<8x64xf32>
    %5 = tpu.matmul %3, %4, %cst_7 {dimension_numbers = #tpu.dot_dimension_numbers<[1], [0], [0], [1], [0, 0, 1, 1], [], []>} : vector<8x8xf32>, vector<8x64xf32>, vector<8x64xf32> -> vector<8x64xf32>
    %6 = arith.addf %2, %5 : vector<8x64xf32>
    %c0_8 = arith.constant 0 : index
    %c0_9 = arith.constant 0 : index
    %7 = vector.load %arg5[%c0_8, %c0_9] : memref<1x64xf32, #tpu.memory_space<vmem>>, vector<1x64xf32>
    %8 = vector.broadcast %7 : vector<1x64xf32> to vector<8x64xf32>
    %9 = arith.addf %6, %8 : vector<8x64xf32>
    %cst_10 = arith.constant 0.00999999977 : f32
    %10 = vector.broadcast %cst_10 : f32 to vector<8x64xf32>
    %11 = arith.mulf %10, %9 : vector<8x64xf32>
    %12 = arith.maximumf %9, %11 : vector<8x64xf32>
    %13 = vector.extract_strided_slice %12 {offsets = [0, 0], sizes = [8, 32], strides = [1, 1]} : vector<8x64xf32> to vector<8x32xf32>
    %c0_11 = arith.constant 0 : index
    %c0_12 = arith.constant 0 : index
    %c0_13 = arith.constant 0 : index
    %14 = vector.load %arg6[%c0_11, %c0_12, %c0_13] : memref<2x32x32xf32, #tpu.memory_space<vmem>>, vector<1x32x32xf32>
    %15 = vector.shape_cast %14 : vector<1x32x32xf32> to vector<32x32xf32>
    %c0_14 = arith.constant 0 : index
    %c0_15 = arith.constant 0 : index
    %c0_16 = arith.constant 0 : index
    %16 = vector.load %arg7[%c0_14, %c0_15, %c0_16] : memref<2x1x32xf32, #tpu.memory_space<vmem>>, vector<1x1x32xf32>
    %17 = vector.shape_cast %16 : vector<1x1x32xf32> to vector<1x32xf32>
    %c0_17 = arith.constant 0 : index
    %c0_18 = arith.constant 0 : index
    %c0_19 = arith.constant 0 : index
    %18 = vector.load %arg8[%c0_17, %c0_18, %c0_19] : memref<2x32x1xf32, #tpu.memory_space<vmem>>, vector<1x32x1xf32>
    %19 = vector.shape_cast %18 : vector<1x32x1xf32> to vector<32x1xf32>
    %c0_20 = arith.constant 0 : index
    %c0_21 = arith.constant 0 : index
    %c0_22 = arith.constant 0 : index
    %20 = vector.load %arg9[%c0_20, %c0_21, %c0_22] : memref<2x1x1xf32, #tpu.memory_space<vmem>>, vector<1x1x1xf32>
    %21 = vector.shape_cast %20 : vector<1x1x1xf32> to vector<1x1xf32>
    %cst_23 = arith.constant dense<0.000000e+00> : vector<8x32xf32>
    %22 = tpu.matmul %13, %15, %cst_23 {dimension_numbers = #tpu.dot_dimension_numbers<[1], [0], [0], [1], [0, 0, 1, 1], [], []>} : vector<8x32xf32>, vector<32x32xf32>, vector<8x32xf32> -> vector<8x32xf32>
    %23 = vector.broadcast %17 : vector<1x32xf32> to vector<8x32xf32>
    %24 = arith.addf %22, %23 : vector<8x32xf32>
    %cst_24 = arith.constant 0.00999999977 : f32
    %25 = vector.broadcast %cst_24 : f32 to vector<8x32xf32>
    %26 = arith.mulf %25, %24 : vector<8x32xf32>
    %27 = arith.maximumf %24, %26 : vector<8x32xf32>
    %cst_25 = arith.constant dense<0.000000e+00> : vector<8x1xf32>
    %28 = tpu.matmul %27, %19, %cst_25 {dimension_numbers = #tpu.dot_dimension_numbers<[1], [0], [0], [1], [0, 0, 1, 1], [], []>} : vector<8x32xf32>, vector<32x1xf32>, vector<8x1xf32> -> vector<8x1xf32>
    %29 = vector.broadcast %21 : vector<1x1xf32> to vector<8x1xf32>
    %30 = arith.addf %28, %29 : vector<8x1xf32>
    %cst_26 = arith.constant 0.00999999977 : f32
    %31 = vector.broadcast %cst_26 : f32 to vector<8x1xf32>
    %32 = arith.mulf %31, %30 : vector<8x1xf32>
    %33 = arith.maximumf %30, %32 : vector<8x1xf32>
    %34 = vector.extract_strided_slice %12 {offsets = [0, 32], sizes = [8, 32], strides = [1, 1]} : vector<8x64xf32> to vector<8x32xf32>
    %c1 = arith.constant 1 : index
    %c0_27 = arith.constant 0 : index
    %c0_28 = arith.constant 0 : index
    %35 = vector.load %arg6[%c1, %c0_27, %c0_28] : memref<2x32x32xf32, #tpu.memory_space<vmem>>, vector<1x32x32xf32>
    %36 = vector.shape_cast %35 : vector<1x32x32xf32> to vector<32x32xf32>
    %c1_29 = arith.constant 1 : index
    %c0_30 = arith.constant 0 : index
    %c0_31 = arith.constant 0 : index
    %37 = vector.load %arg7[%c1_29, %c0_30, %c0_31] : memref<2x1x32xf32, #tpu.memory_space<vmem>>, vector<1x1x32xf32>
    %38 = vector.shape_cast %37 : vector<1x1x32xf32> to vector<1x32xf32>
    %c1_32 = arith.constant 1 : index
    %c0_33 = arith.constant 0 : index
    %c0_34 = arith.constant 0 : index
    %39 = vector.load %arg8[%c1_32, %c0_33, %c0_34] : memref<2x32x1xf32, #tpu.memory_space<vmem>>, vector<1x32x1xf32>
    %40 = vector.shape_cast %39 : vector<1x32x1xf32> to vector<32x1xf32>
    %c1_35 = arith.constant 1 : index
    %c0_36 = arith.constant 0 : index
    %c0_37 = arith.constant 0 : index
    %41 = vector.load %arg9[%c1_35, %c0_36, %c0_37] : memref<2x1x1xf32, #tpu.memory_space<vmem>>, vector<1x1x1xf32>
    %42 = vector.shape_cast %41 : vector<1x1x1xf32> to vector<1x1xf32>
    %cst_38 = arith.constant dense<0.000000e+00> : vector<8x32xf32>
    %43 = tpu.matmul %34, %36, %cst_38 {dimension_numbers = #tpu.dot_dimension_numbers<[1], [0], [0], [1], [0, 0, 1, 1], [], []>} : vector<8x32xf32>, vector<32x32xf32>, vector<8x32xf32> -> vector<8x32xf32>
    %44 = vector.broadcast %38 : vector<1x32xf32> to vector<8x32xf32>
    %45 = arith.addf %43, %44 : vector<8x32xf32>
    %cst_39 = arith.constant 0.00999999977 : f32
    %46 = vector.broadcast %cst_39 : f32 to vector<8x32xf32>
    %47 = arith.mulf %46, %45 : vector<8x32xf32>
    %48 = arith.maximumf %45, %47 : vector<8x32xf32>
    %cst_40 = arith.constant dense<0.000000e+00> : vector<8x1xf32>
    %49 = tpu.matmul %48, %40, %cst_40 {dimension_numbers = #tpu.dot_dimension_numbers<[1], [0], [0], [1], [0, 0, 1, 1], [], []>} : vector<8x32xf32>, vector<32x1xf32>, vector<8x1xf32> -> vector<8x1xf32>
    %50 = vector.broadcast %42 : vector<1x1xf32> to vector<8x1xf32>
    %51 = arith.addf %49, %50 : vector<8x1xf32>
    %cst_41 = arith.constant 0.00999999977 : f32
    %52 = vector.broadcast %cst_41 : f32 to vector<8x1xf32>
    %53 = arith.mulf %52, %51 : vector<8x1xf32>
    %54 = arith.maximumf %51, %53 : vector<8x1xf32>
    %55 = tpu.concatenate %33, %54 in 1 : vector<8x1xf32>, vector<8x1xf32> -> vector<8x2xf32>
    %c0_42 = arith.constant 0 : index
    %c0_43 = arith.constant 0 : index
    %56 = vector.load %arg10[%c0_42, %c0_43] : memref<8x2xf32, #tpu.memory_space<vmem>>, vector<8x2xf32>
    tpu.vector_store %arg10[%c0_42, %c0_43], %55 {strides = array<i32>} : memref<8x2xf32, #tpu.memory_space<vmem>>, vector<8x2xf32>,
    return
  }
  func.func @transform_0(%arg0: i32) -> (i32, i32) {
    %c0_i32 = arith.constant 0 : i32
    %c0_i32_0 = arith.constant 0 : i32
    return %arg0, %c0_i32 : i32, i32
  }
  func.func @transform_1(%arg0: i32) -> (i32, i32) {
    %c0_i32 = arith.constant 0 : i32
    %c0_i32_0 = arith.constant 0 : i32
    return %arg0, %c0_i32 : i32, i32
  }
  func.func @transform_2(%arg0: i32) -> (i32, i32) {
    %c0_i32 = arith.constant 0 : i32
    %c0_i32_0 = arith.constant 0 : i32
    %c0_i32_1 = arith.constant 0 : i32
    return %c0_i32, %c0_i32_0 : i32, i32
  }
  func.func @transform_3(%arg0: i32) -> (i32, i32) {
    %c0_i32 = arith.constant 0 : i32
    %c0_i32_0 = arith.constant 0 : i32
    %c0_i32_1 = arith.constant 0 : i32
    return %c0_i32, %c0_i32_0 : i32, i32
  }
  func.func @transform_4(%arg0: i32) -> (i32, i32) {
    %c0_i32 = arith.constant 0 : i32
    %c0_i32_0 = arith.constant 0 : i32
    %c0_i32_1 = arith.constant 0 : i32
    return %c0_i32, %c0_i32_0 : i32, i32
  }
  func.func @transform_5(%arg0: i32) -> (i32, i32, i32) {
    %c0_i32 = arith.constant 0 : i32
    %c0_i32_0 = arith.constant 0 : i32
    %c0_i32_1 = arith.constant 0 : i32
    %c0_i32_2 = arith.constant 0 : i32
    return %c0_i32, %c0_i32_0, %c0_i32_1 : i32, i32, i32
  }
  func.func @transform_6(%arg0: i32) -> (i32, i32, i32) {
    %c0_i32 = arith.constant 0 : i32
    %c0_i32_0 = arith.constant 0 : i32
    %c0_i32_1 = arith.constant 0 : i32
    %c0_i32_2 = arith.constant 0 : i32
    return %c0_i32, %c0_i32_0, %c0_i32_1 : i32, i32, i32
  }
  func.func @transform_7(%arg0: i32) -> (i32, i32, i32) {
    %c0_i32 = arith.constant 0 : i32
    %c0_i32_0 = arith.constant 0 : i32
    %c0_i32_1 = arith.constant 0 : i32
    %c0_i32_2 = arith.constant 0 : i32
    return %c0_i32, %c0_i32_0, %c0_i32_1 : i32, i32, i32
  }
  func.func @transform_8(%arg0: i32) -> (i32, i32, i32) {
    %c0_i32 = arith.constant 0 : i32
    %c0_i32_0 = arith.constant 0 : i32
    %c0_i32_1 = arith.constant 0 : i32
    %c0_i32_2 = arith.constant 0 : i32
    return %c0_i32, %c0_i32_0, %c0_i32_1 : i32, i32, i32
  }
  func.func @transform_9(%arg0: i32) -> (i32, i32) {
    %c0_i32 = arith.constant 0 : i32
    %c0_i32_0 = arith.constant 0 : i32
    return %arg0, %c0_i32 : i32, i32
  }
}

</mosaic_0001>

<bundles_post_ra>
// kernel: critic_forward.1
= control target key start
LH: loop header
LB: loop body
LE: loop exit
PB: predicated region body
PF: predicated region fallthrough
CT: control target
= control target key end

     0   :  { %14 = vsyncpa [#allocation3], 0  ;;  %s574_s0 = inlined_call_operand.hbm [shape: f32[8,24], index: 0, kind: input, shape index: {}]   ;;  %s575_s1 = inlined_call_operand.hbm [shape: f32[8,8], index: 1, kind: input, shape index: {}]   ;;  %s576_s2 = inlined_call_operand.hbm [shape: f32[24,64], index: 2, kind: input, shape index: {}]   ;;  %s577_s3 = inlined_call_operand.hbm [shape: f32[8,64], index: 3, kind: input, shape index: {}]   ;;  %s578_s4 = inlined_call_operand.vmem [shape: f32[1,64], index: 4, kind: input, shape index: {}]   ;;  %s579_s5 = inlined_call_operand.vmem [shape: f32[2,32,32], index: 5, kind: input, shape index: {}]   ;;  %s580_s6 = inlined_call_operand.vmem [shape: f32[2,1,32], index: 6, kind: input, shape index: {}]   ;;  %s581_s7 = inlined_call_operand.vmem [shape: f32[2,32,1], index: 7, kind: input, shape index: {}]   ;;  %s582_s8 = inlined_call_operand.vmem [shape: f32[2,1,1], index: 8, kind: input, shape index: {}]   ;;  %s583_s9 = inlined_call_operand.vmem [shape: f32[8,2], index: 9, kind: output, shape index: {}]  }
   0x1   :  { %15 = vsyncpa [#allocation5], 0  ;;  %s33_s11 = sshll.u32 %s575_s1, 4  ;;  %s34_s11 = int_to_ptr.hbm [resolvable:$true] %s33_s11 }
   0x2   :  { %16 = vsyncpa [#allocation8], 0  ;;  %s434_s12 = smov [#allocation4]   ;;  %s22_s16 = sshll.u32 %s574_s0, 4  ;;  %s23_s16 = int_to_ptr.hbm [resolvable:$true] %s22_s16 }
   0x3   :  { %s35_s13 = sshll.u32 %s434_s12, 4  ;;  %s435_s17 = smov [#allocation2]   ;;  %s36_s13 = int_to_ptr.vmem [resolvable:$true] %s35_s13 }
   0x4   :  { %38 = dma.hbm_to_vmem [thread:$0]  %s34_s11, 128, %s36_s13, [#allocation5]  }
   0x5   :  { %s24_s18 = sshll.u32 %s435_s17, 4  ;;  %s43_s21 = sshll.u32 %s576_s2, 4  ;;  %s25_s18 = int_to_ptr.vmem [resolvable:$true] %s24_s18  ;;  %s44_s21 = int_to_ptr.hbm [resolvable:$true] %s43_s21 }
   0x6   :  { %27 = dma.hbm_to_vmem [thread:$0]  %s23_s16, 128, %s25_s18, [#allocation3]  }
   0x7   :  { %s436_s1 = smov [#allocation6]   ;;  %s57_s25 = sshll.u32 %s577_s3, 4  ;;  %s58_s25 = int_to_ptr.hbm [resolvable:$true] %s57_s25 }
   0x8   :  { %s45_s22 = sshll.u32 %s436_s1, 4  ;;  %s437_s26 = smov 128   ;;  %s46_s22 = int_to_ptr.vmem [resolvable:$true] %s45_s22 }
   0x9   :  { %s438_s0 = smov 8   ;;  %s439_s27 = smov [#allocation7]  }
   0xa   :  { %51 = dma.hbm_to_vmem [thread:$0]  %s44_s21, 384, %s46_s22, [#allocation5], %s437_s26, %s437_s26, %s438_s0  }
   0xb   :  { %s59_s28 = sshll.u32 %s439_s27, 4  ;;  %s60_s28 = int_to_ptr.vmem [resolvable:$true] %s59_s28 }
   0xc   :  { %62 = dma.hbm_to_vmem [thread:$0]  %s58_s25, 128, %s60_s28, [#allocation8]  }
   0xd   :  { %428 = dma.done.wait [#allocation3], 128  }
   0xe   :  { %429 = vsyncadd [#allocation3], 4294967168 }
   0xf   :  { %430 = dma.done.wait [#allocation5], 512  }
  0x10   :  { %431 = vsyncadd [#allocation5], 4294966784 }
  0x11   :  { %432 = dma.done.wait [#allocation8], 128  }
  0x12   :  { %433 = vsyncadd [#allocation8], 4294967168  ;;  %vm95_vm0 = vcmask 64512   ;;  %v92_v0 = vld [vmem:[#allocation6 + $0x10] sm:$0xff]  ;;  %v91_v1 = vld [vmem:[#allocation6 + $0x8] sm:$0xff]  ;;  %vm119_vm1 = vcmask 195584  }
  0x13   :  { %v94_v2 = vld [vmem:[#allocation7] sm:$0xff]  ;;  %136 = vmatpush.msra.mxu1 %v92_v0  ;;  %v90_v3 = vld [vmem:[#allocation6] sm:$0xff]  ;;  %v89_v5 = vld [vmem:[#allocation2] sm:$0xff]  ;;  %vm163_vm2 = vcmask 261120   ;;  %s440_s23 = smov 96   ;;  %vm292_vm3 = vcmask 7168  }
  0x14   :  { %114 = vmatpush.msra.mxu0 %v94_v2  ;;  %v93_v4 = vld [vmem:[#allocation4] sm:$0xff]  ;;  %v153_v6 = vld [vmem:[%s579_s5 + $0x18] sm:$0xff]  ;;  %v152_v7 = vld [vmem:[%s579_s5 + $0x10] sm:$0xff]  ;;  %vm294_vm4 = vcmask 15360  }
  0x15   :  { %303 = vmatmul.msk.f32.vlgmr.msra.gmra.mxu0 %vm95_vm0, %v93_v4  ;;  %137 = vmatpush.msra.mxu1 %v91_v1  ;;  %v151_v8 = vld [vmem:[%s579_s5 + $0x8] sm:$0xff]  ;;  %v150_v9 = vld [vmem:[%s579_s5] sm:$0xff]  ;;  %v310_v10 = vld [vmem:[%s579_s5 + $0x38] sm:$0xff] }
  0x16   :  { %179 = vmatpush.msra.mxu2 %v153_v6  ;;  %v309_v11 = vld [vmem:[%s579_s5 + $0x30] sm:$0xff]  ;;  %250 = vmatpush.msrb.mxu0 %v310_v10  ;;  %v308_v12 = vld [vmem:[%s579_s5 + $0x28] sm:$0xff]  ;;  %v307_v13 = vld [vmem:[%s579_s5 + $0x20] sm:$0xff] }
  0x17   :  { %138 = vmatpush.msra.mxu1 %v90_v3  ;;  %v327_v15 = vld [vmem:[%s578_s4] ss:$0 sm:$0xff]  ;;  %v158_v21 = vld [vmem:[%s581_s7 + $0x18] sm:$0xff]  ;;  %v157_v22 = vld [vmem:[%s581_s7 + $0x10] sm:$0xff] }
  0x18   :  { %304 = vmatmul.msk.f32.vlgmr.msra.gmra.mxu1 %vm119_vm1, %v89_v5  ;;  %180 = vmatpush.msra.mxu2 %v152_v7  ;;  %v156_v23 = vld [vmem:[%s581_s7 + $0x8] sm:$0xff]  ;;  %v155_v24 = vld [vmem:[%s581_s7] sm:$0xff]  ;;  %v315_v25 = vld [vmem:[%s581_s7 + $0x38] sm:$0xff] }
  0x19   :  { %251 = vmatpush.msrb.mxu0 %v309_v11  ;;  %207 = vmatpush.msra.mxu3 %v158_v21  ;;  %v328_v27 = vld [vmem:[%s580_s6] ss:$0 sm:$0xff]  ;;  %v314_v32 = vld [vmem:[%s581_s7 + $0x30] sm:$0xff]  ;;  %v313_v33 = vld [vmem:[%s581_s7 + $0x28] sm:$0xff] }
  0x1a   :  { %181 = vmatpush.msra.mxu2 %v151_v8  ;;  %278 = vmatpush.msrb.mxu1 %v315_v25  ;;  %v312_v34 = vld [vmem:[%s581_s7 + $0x20] sm:$0xff]  ;;  %s441_s7 = smov 1  }
  0x1b   :  { %252 = vmatpush.msrb.mxu0 %v308_v12  ;;  %208 = vmatpush.msra.mxu3 %v157_v22  ;;  %v329_v35 = vld [vmem:[%s580_s6 + $0x1] ss:$0 sm:$0xff]  ;;  %v330_v45 = vld [vmem:[%s582_s8] ss:$0 sm:$0xff] }
  0x1c   :  { %182 = vmatpush.msra.mxu2 %v150_v9  ;;  %279 = vmatpush.msrb.mxu1 %v314_v32  ;;  %v331_v40 = vld [vmem:[%s582_s8 + $0x1] ss:$0 sm:$0xff] }
  0x1d   :  { %253 = vmatpush.msrb.mxu0 %v307_v13  ;;  %209 = vmatpush.msra.mxu3 %v156_v23 }
  0x1e   :  { %280 = vmatpush.msrb.mxu1 %v313_v33 }
  0x1f   :  { %210 = vmatpush.msra.mxu3 %v155_v24 }
  0x20   :  { %281 = vmatpush.msrb.mxu1 %v312_v34 }
  0x92   :  { %v116_v14 = vpop.f32.mrf.mxu0 }
  0x95   :  { %v140_v16 = vpop.f32.mrf.mxu1 }
  0x96   :  { %v141_v17 = vadd.f32 %v140_v16, %v116_v14 }
  0x98   :  { %v147_v18 = vadd.f32 %v327_v15, %v141_v17 }
  0x9a   :  { %v148_v19 = vmul.f32 0.01, %v147_v18 }
  0x9c   :  { %v149_v20 = vmax.f32 %v147_v18, %v148_v19 }
  0x9e   :  { %234 = vrot.lane.b32.xlu0 %v149_v20, %s440_s23  ;;  %305 = vmatmul.msk.f32.vlgmr.msra.gmra.mxu2 %vm163_vm2, %v149_v20 }
 0x110   :  { %v235_v26 = vpop.permute.xlu0 %234 }
 0x111   :  { %317 = vmatmul.msk.f32.vlgmr.msrb.gmra.mxu0 %vm163_vm2, %v235_v26 }
 0x121   :  { %v184_v28 = vpop.f32.mrf.mxu2 }
 0x122   :  { %v185_v29 = vadd.f32 %v328_v27, %v184_v28 }
 0x124   :  { %v187_v30 = vmul.f32 0.01, %v185_v29 }
 0x126   :  { %v188_v31 = vmax.f32 %v185_v29, %v187_v30 }
 0x128   :  { %306 = vmatmul.msk.f32.vlgmr.msra.gmra.mxu3 %vm163_vm2, %v188_v31 }
 0x18e   :  { %v255_v36 = vpop.f32.mrf.mxu0 }
 0x18f   :  { %v256_v37 = vadd.f32 %v329_v35, %v255_v36 }
 0x191   :  { %v258_v38 = vmul.f32 0.01, %v256_v37 }
 0x193   :  { %v259_v39 = vmax.f32 %v256_v37, %v258_v38 }
 0x195   :  { %318 = vmatmul.msk.f32.vlgmr.msrb.gmra.mxu1 %vm163_vm2, %v259_v39 }
 0x1ab   :  { %v212_v46 = vpop.f32.mrf.mxu3 }
 0x1ac   :  { %v213_v47 = vadd.f32 %v330_v45, %v212_v46 }
 0x1ae   :  { %v215_v48 = vmul.f32 0.01, %v213_v47 }
 0x1b0   :  { %v216_v49 = vmax.f32 %v213_v47, %v215_v48 }
 0x212   :  { %v283_v41 = vpop.f32.mrf.mxu1 }
 0x213   :  { %v284_v42 = vadd.f32 %v331_v40, %v283_v41 }
 0x215   :  { %v286_v43 = vmul.f32 0.01, %v284_v42 }
 0x217   :  { %v287_v44 = vmax.f32 %v284_v42, %v286_v43 }
 0x219   :  { %289 = vrot.lane.b32.xlu0 %v287_v44, %s441_s7 }
 0x28b   :  { %v290_v50 = vpop.permute.xlu0 %289 }
 0x28c   :  { %v293_v51 = vsel %vm292_vm3, %v216_v49, %v290_v50 }
 0x28d   :  { %295 = vst.msk [vmem:[%s583_s9] sm:$0xff] %vm294_vm4, %v293_v51 }
 0x28e   :  { %300 = vsyncpa [#allocation3], 1 }
 0x28f   :  { %301 = vsyncpa [#allocation5], 1 }
 0x290   :  { %302 = vsyncpa [#allocation8], 1 }

</bundles_post_ra>
